<compile_context>
chip_gen: v6e
topology: v6e:2x2x1
jax: 0.10.0
libtpu: 0.0.40
codegen_flags: <defaults>
</compile_context>

<pallas_src>
import math
import jax
import jax.numpy as jnp
from jax import lax
from jax.experimental import pallas as pl
from jax.experimental.pallas import tpu as pltpu


def _round_up(x, m):
    return (x + m - 1) // m * m


def _mlp_kernel(x_ref, wfc_ref, wproj_ref, o_ref, acc_ref):
    # x_ref:     (tm, dim)   current row-tile of activations
    # wfc_ref:   (th, dim)   hidden-tile of W_fc   (native PyTorch layout)
    # wproj_ref: (dim, th)   hidden-tile of W_proj (native PyTorch layout)
    # o_ref:     (tm, dim)   output row-tile
    # acc_ref:   (tm, dim)   f32 accumulator scratch (resident across k)
    k = pl.program_id(1)

    @pl.when(k == 0)
    def _():
        acc_ref[...] = jnp.zeros_like(acc_ref)

    # h_k = x @ W_fc[k_tile]^T  : contract x last dim with wfc last dim (= dim)
    h = lax.dot_general(
        x_ref[...], wfc_ref[...],
        dimension_numbers=(((1,), (1,)), ((), ())),
        preferred_element_type=jnp.float32)              # (tm, th) f32

    # relu(h)^2 in f32 on the VPU
    h = jnp.maximum(h, 0.0)
    h = h * h

    # y += h_k @ W_proj[:, k_tile]^T : contract h last dim with wproj last dim (= th)
    acc_ref[...] += lax.dot_general(
        h.astype(wproj_ref.dtype), wproj_ref[...],
        dimension_numbers=(((1,), (1,)), ((), ())),
        preferred_element_type=jnp.float32)              # (tm, dim) f32

    @pl.when(k == pl.num_programs(1) - 1)
    def _():
        o_ref[...] = acc_ref[...].astype(o_ref.dtype)


def mlp_forward(x, w_fc, w_proj, *, tm=256, th=512):
    """x: (..., dim); w_fc: (4*dim, dim); w_proj: (dim, 4*dim)  (PyTorch layout)."""
    dim = x.shape[-1]
    hidden = w_fc.shape[0]
    assert w_fc.shape == (hidden, dim)
    assert w_proj.shape == (dim, hidden)

    dtype = x.dtype
    # CastedLinear: weight.to(x.dtype).  (No-op if already matching; pass bf16
    # activations to get bf16 MXU throughput.)  No transposes here.
    w_fc = w_fc.astype(dtype)
    w_proj = w_proj.astype(dtype)

    orig_shape = x.shape
    x2d = x.reshape(-1, dim)
    M = x2d.shape[0]

    # Tile sizes: shrink for tiny inputs, keep 128-aligned for all generations.
    tm_eff = min(tm, _round_up(M, 128))
    th_eff = min(th, _round_up(hidden, 128))

    # Pad rows / dims so every block is full (lane-dense, unmasked stores).
    Mp = _round_up(M, tm_eff)
    dim_p = _round_up(dim, 128)
    hidden_p = _round_up(hidden, th_eff)

    if Mp != M or dim_p != dim:
        x2d = jnp.pad(x2d, ((0, Mp - M), (0, dim_p - dim)))
    if hidden_p != hidden or dim_p != dim:
        w_fc = jnp.pad(w_fc, ((0, hidden_p - hidden), (0, dim_p - dim)))
        w_proj = jnp.pad(w_proj, ((0, dim_p - dim), (0, hidden_p - hidden)))

    grid = (Mp // tm_eff, hidden_p // th_eff)

    itemsize = jnp.dtype(dtype).itemsize
    cost = pl.CostEstimate(
        flops=4 * Mp * dim_p * hidden_p,      # two matmuls
        transcendentals=0,
        bytes_accessed=(Mp * dim_p + hidden_p * dim_p
                        + dim_p * hidden_p + Mp * dim_p) * itemsize,
    )

    out = pl.pallas_call(
        _mlp_kernel,
        out_shape=jax.ShapeDtypeStruct((Mp, dim_p), dtype),
        grid_spec=pltpu.PrefetchScalarGridSpec(
            num_scalar_prefetch=0,
            grid=grid,
            in_specs=[
                pl.BlockSpec((tm_eff, dim_p), lambda i, k: (i, 0)),   # x rows
                pl.BlockSpec((th_eff, dim_p), lambda i, k: (k, 0)),   # W_fc tile
                pl.BlockSpec((dim_p, th_eff), lambda i, k: (0, k)),   # W_proj tile
            ],
            out_specs=pl.BlockSpec((tm_eff, dim_p), lambda i, k: (i, 0)),
            scratch_shapes=[pltpu.VMEM((tm_eff, dim_p), jnp.float32)],
        ),
        compiler_params=pltpu.CompilerParams(
            dimension_semantics=("parallel", "arbitrary")),
        cost_estimate=cost,
    )(x2d, w_fc, w_proj)

    out = out[:M, :dim]
    return out.reshape(orig_shape)


def _mlp_reference(x, w_fc, w_proj):
    h = x @ w_fc.T.astype(x.dtype)
    h = jnp.square(jnp.maximum(h, 0.0))
    return h @ w_proj.T.astype(x.dtype)


if __name__ == "__main__":
    # Small shapes consistent with the module: (batch, seq, dim), hidden = 4*dim.
    B, T, dim = 2, 8, 128
    hidden = 4 * dim

    key = jax.random.PRNGKey(0)
    kx, kw1, kw2 = jax.random.split(key, 3)

    x = jax.random.normal(kx, (B, T, dim), dtype=jnp.float32)

    # nn.Linear-style uniform(-1/sqrt(in), 1/sqrt(in)) init for c_fc.
    bound = 1.0 / math.sqrt(dim)
    w_fc = jax.random.uniform(kw1, (hidden, dim), dtype=jnp.float32,
                              minval=-bound, maxval=bound)

    # 1) Validate the full fused path with a NONZERO projection weight
    #    (the module's zero init would make the check vacuous).
    bound_p = 1.0 / math.sqrt(hidden)
    w_proj_rand = jax.random.uniform(kw2, (dim, hidden), dtype=jnp.float32,
                                     minval=-bound_p, maxval=bound_p)
    y = jax.block_until_ready(mlp_forward(x, w_fc, w_proj_rand))
    y_ref = _mlp_reference(x, w_fc, w_proj_rand)
    assert y.shape == x.shape
    assert jnp.allclose(y, y_ref, atol=1e-4, rtol=1e-4), "mismatch vs reference"

    # 2) Module's actual init: c_proj.weight.data.zero_() -> output must be zeros.
    w_proj_zero = jnp.zeros((dim, hidden), dtype=jnp.float32)
    y0 = jax.block_until_ready(mlp_forward(x, w_fc, w_proj_zero))
    assert jnp.allclose(y0, jnp.zeros_like(y0)), "zero-init projection mismatch"

    print("KERNEL_OK")
</pallas_src>

<mosaic_0001>
module attributes {stable_mosaic.version = 11 : i64} {
  func.func @_mlp_kernel(%arg0: i32, %arg1: i32, %arg2: memref<128x128xf32, #tpu.memory_space<vmem>>, %arg3: memref<512x128xf32, #tpu.memory_space<vmem>>, %arg4: memref<128x512xf32, #tpu.memory_space<vmem>>, %arg5: memref<128x128xf32, #tpu.memory_space<vmem>>, %arg6: memref<128x128xf32, #tpu.memory_space<vmem>>) attributes {dimension_semantics = [#tpu.dimension_semantics<parallel>, #tpu.dimension_semantics<arbitrary>], iteration_bounds = array<i64: 1, 1>, scalar_prefetch = 0 : i64, scratch_operands = 1 : i64, tpu.core_type = #tpu.core_type<tc>, window_params = [{transform_indices = @transform_0, window_bounds = array<i64: 128, 128>}, {transform_indices = @transform_1, window_bounds = array<i64: 512, 128>}, {transform_indices = @transform_2, window_bounds = array<i64: 128, 512>}, {transform_indices = @transform_3, window_bounds = array<i64: 128, 128>}]} {
    %c0_i32 = arith.constant 0 : i32
    %0 = arith.cmpi eq, %arg1, %c0_i32 : i32
    %1 = arith.extui %0 : i1 to i32
    %c0_i32_0 = arith.constant 0 : i32
    %2 = arith.cmpi ne, %1, %c0_i32_0 : i32
    scf.if %2 {
      %cst_14 = arith.constant 0.000000e+00 : f32
      %17 = vector.broadcast %cst_14 : f32 to vector<128x128xf32>
      %c0_15 = arith.constant 0 : index
      %c0_16 = arith.constant 0 : index
      %18 = vector.load %arg6[%c0_15, %c0_16] : memref<128x128xf32, #tpu.memory_space<vmem>>, vector<128x128xf32>
      tpu.vector_store %arg6[%c0_15, %c0_16], %17 {strides = array<i32>} : memref<128x128xf32, #tpu.memory_space<vmem>>, vector<128x128xf32>,
    } else {
    }
    %c0 = arith.constant 0 : index
    %c0_1 = arith.constant 0 : index
    %3 = vector.load %arg2[%c0, %c0_1] : memref<128x128xf32, #tpu.memory_space<vmem>>, vector<128x128xf32>
    %c0_2 = arith.constant 0 : index
    %c0_3 = arith.constant 0 : index
    %4 = vector.load %arg3[%c0_2, %c0_3] : memref<512x128xf32, #tpu.memory_space<vmem>>, vector<512x128xf32>
    %cst = arith.constant dense<0.000000e+00> : vector<128x512xf32>
    %5 = tpu.matmul %3, %4, %cst {dimension_numbers = #tpu.dot_dimension_numbers<[1], [1], [0], [0], [0, 0, 1, 0], [], []>} : vector<128x128xf32>, vector<512x128xf32>, vector<128x512xf32> -> vector<128x512xf32>
    %cst_4 = arith.constant 0.000000e+00 : f32
    %6 = vector.broadcast %cst_4 : f32 to vector<128x512xf32>
    %7 = arith.maximumf %5, %6 : vector<128x512xf32>
    %8 = arith.mulf %7, %7 : vector<128x512xf32>
    %c0_5 = arith.constant 0 : index
    %c0_6 = arith.constant 0 : index
    %9 = vector.load %arg6[%c0_5, %c0_6] : memref<128x128xf32, #tpu.memory_space<vmem>>, vector<128x128xf32>
    %c0_7 = arith.constant 0 : index
    %c0_8 = arith.constant 0 : index
    %10 = vector.load %arg4[%c0_7, %c0_8] : memref<128x512xf32, #tpu.memory_space<vmem>>, vector<128x512xf32>
    %cst_9 = arith.constant dense<0.000000e+00> : vector<128x128xf32>
    %11 = tpu.matmul %8, %10, %cst_9 {dimension_numbers = #tpu.dot_dimension_numbers<[1], [1], [0], [0], [0, 0, 1, 0], [], []>} : vector<128x512xf32>, vector<128x512xf32>, vector<128x128xf32> -> vector<128x128xf32>
    %12 = arith.addf %9, %11 : vector<128x128xf32>
    %c0_10 = arith.constant 0 : index
    %c0_11 = arith.constant 0 : index
    %13 = vector.load %arg6[%c0_10, %c0_11] : memref<128x128xf32, #tpu.memory_space<vmem>>, vector<128x128xf32>
    tpu.vector_store %arg6[%c0_10, %c0_11], %12 {strides = array<i32>} : memref<128x128xf32, #tpu.memory_space<vmem>>, vector<128x128xf32>,
    %c0_i32_12 = arith.constant 0 : i32
    %14 = arith.cmpi eq, %arg1, %c0_i32_12 : i32
    %15 = arith.extui %14 : i1 to i32
    %c0_i32_13 = arith.constant 0 : i32
    %16 = arith.cmpi ne, %15, %c0_i32_13 : i32
    scf.if %16 {
      %c0_14 = arith.constant 0 : index
      %c0_15 = arith.constant 0 : index
      %17 = vector.load %arg6[%c0_14, %c0_15] : memref<128x128xf32, #tpu.memory_space<vmem>>, vector<128x128xf32>
      %c0_16 = arith.constant 0 : index
      %c0_17 = arith.constant 0 : index
      %18 = vector.load %arg5[%c0_16, %c0_17] : memref<128x128xf32, #tpu.memory_space<vmem>>, vector<128x128xf32>
      tpu.vector_store %arg5[%c0_16, %c0_17], %17 {strides = array<i32>} : memref<128x128xf32, #tpu.memory_space<vmem>>, vector<128x128xf32>,
    } else {
    }
    return
  }
  func.func @transform_0(%arg0: i32, %arg1: i32) -> (i32, i32) {
    %c0_i32 = arith.constant 0 : i32
    %c0_i32_0 = arith.constant 0 : i32
    return %arg0, %c0_i32 : i32, i32
  }
  func.func @transform_1(%arg0: i32, %arg1: i32) -> (i32, i32) {
    %c0_i32 = arith.constant 0 : i32
    %c0_i32_0 = arith.constant 0 : i32
    return %arg1, %c0_i32 : i32, i32
  }
  func.func @transform_2(%arg0: i32, %arg1: i32) -> (i32, i32) {
    %c0_i32 = arith.constant 0 : i32
    %c0_i32_0 = arith.constant 0 : i32
    return %c0_i32, %arg1 : i32, i32
  }
  func.func @transform_3(%arg0: i32, %arg1: i32) -> (i32, i32) {
    %c0_i32 = arith.constant 0 : i32
    %c0_i32_0 = arith.constant 0 : i32
    return %arg0, %c0_i32 : i32, i32
  }
}

</mosaic_0001>

<bundles_post_ra>
// kernel: tpu_custom_call.1
= control target key start
LH: loop header
LB: loop body
LE: loop exit
PB: predicated region body
PF: predicated region fallthrough
CT: control target
= control target key end

     0   :  { %8 = vsyncpa [#allocation4], 0  ;;  %s1338_s0 = inlined_call_operand.hbm [shape: f32[128,128], index: 0, kind: input, shape index: {}]   ;;  %s1339_s1 = inlined_call_operand.hbm [shape: f32[512,128], index: 1, kind: input, shape index: {}]   ;;  %s1340_s2 = inlined_call_operand.hbm [shape: f32[128,512], index: 2, kind: input, shape index: {}]   ;;  %s1341_s3 = inlined_call_operand.hbm [shape: f32[128,128], index: 3, kind: output, shape index: {}]  }
   0x1   :  { %9 = vsyncpa [#allocation7], 0 }
   0x2   :  { %10 = vsyncpa [#allocation5], 0  ;;  %s1283_s12 = smov [#allocation6]   ;;  %s1284_s14 = smov [#allocation3]  }
   0x3   :  { %s28_s13 = sshll.u32 %s1283_s12, 4  ;;  %s16_s15 = sshll.u32 %s1284_s14, 4  ;;  %s29_s13 = int_to_ptr.vmem [resolvable:$true] %s28_s13  ;;  %s17_s15 = int_to_ptr.vmem [resolvable:$true] %s16_s15 }
   0x4   :  { %s1205_s16 = scalar_lea.vmem %s29_s13, 8192  ;;  %p1210_p1 = scmp.lt.s32.totalorder %s29_s13, %s29_s13 }
   0x5   :  { %p1206_p0 = scmp.ne.s32.totalorder %s29_s13, %s1205_s16  ;;  %p1211_p2 = scmp.lt.s32.totalorder %s1205_s16, %s1205_s16 }
   0x7   :  { %p1212_p3 = por %p1211_p2, %p1210_p1 }
   0x9   :  { %p1213_p4 = pnand %p1212_p3, %p1206_p0 }
   0xb   :  { %1216 = shalt.err (!%p1213_p4)
}
   0xc   :  { %s1285_s17 = smov 128   ;;  %s1286_s18 = smov 8  }
   0xd   :  { %34 = dma.hbm_to_vmem [thread:$0]  %s1339_s1, 8192, %s29_s13, [#allocation7], %s1285_s17, %s1285_s17, %s1286_s18  }
   0xe   :  { %s1225_s21 = scalar_lea.vmem %s17_s15, 2048  ;;  %p1230_p6 = scmp.lt.s32.totalorder %s17_s15, %s17_s15 }
   0xf   :  { %p1226_p5 = scmp.ne.s32.totalorder %s17_s15, %s1225_s21  ;;  %p1231_p7 = scmp.lt.s32.totalorder %s1225_s21, %s1225_s21 }
  0x11   :  { %p1232_p8 = por %p1231_p7, %p1230_p6 }
  0x13   :  { %p1233_p9 = pnand %p1232_p8, %p1226_p5 }
  0x15   :  { %1236 = shalt.err (!%p1233_p9)
}
  0x16   :  { %22 = dma.hbm_to_vmem [thread:$0]  %s1338_s0, 2048, %s17_s15, [#allocation4], %s1285_s17, %s1285_s17, %s1286_s18  }
  0x17   :  { %s1287_s24 = smov [#allocation8]  }
  0x18   :  { %s40_s25 = sshll.u32 %s1287_s24, 4  ;;  %s41_s25 = int_to_ptr.vmem [resolvable:$true] %s40_s25 }
  0x19   :  { %s1245_s26 = scalar_lea.vmem %s41_s25, 8192  ;;  %p1250_p11 = scmp.lt.s32.totalorder %s41_s25, %s41_s25 }
  0x1a   :  { %p1246_p10 = scmp.ne.s32.totalorder %s41_s25, %s1245_s26  ;;  %p1251_p12 = scmp.lt.s32.totalorder %s1245_s26, %s1245_s26 }
  0x1c   :  { %p1252_p13 = por %p1251_p12, %p1250_p11 }
  0x1e   :  { %p1253_p0 = pnand %p1252_p13, %p1246_p10 }
  0x20   :  { %1256 = shalt.err (!%p1253_p0)
}
  0x21   :  { %s1288_s1 = smov 512   ;;  %s1289_s27 = smov 32  }
  0x22   :  { %46 = dma.hbm_to_vmem [thread:$0]  %s1340_s2, 8192, %s41_s25, [#allocation7], %s1288_s1, %s1288_s1, %s1289_s27  }
  0x23   :  { %1277 = dma.done.wait [#allocation4], 2048  }
  0x24   :  { %1278 = vsyncadd [#allocation4], 4294965248 }
  0x25   :  { %1279 = dma.done.wait [#allocation7], 16384  }
  0x26   :  { %1280 = vsyncadd [#allocation7], 4294950912  ;;  %v123_v0 = vld [vmem:[#allocation6 + $0xf8] sm:$0xff]  ;;  %v122_v4 = vld [vmem:[#allocation6 + $0xf0] sm:$0xff]  ;;  %s1290_s0 = smov [#allocation9]  }
  0x27   :  { %v155_v1 = vld [vmem:[#allocation6 + $0x1f8] sm:$0xff]  ;;  %1061 = vmatprep.subr.mxu0 %v123_v0  ;;  %v154_v5 = vld [vmem:[#allocation6 + $0x1f0] sm:$0xff]  ;;  %v121_v8 = vld [vmem:[#allocation6 + $0xe8] sm:$0xff]  ;;  %s1048_s2 = sshll.u32 %s1290_s0, 4  ;;  %s1049_s2 = int_to_ptr.vmem [resolvable:$true] %s1048_s2 }
  0x28   :  { %v107_v2 = vld [vmem:[#allocation6 + $0x78] sm:$0xff]  ;;  %1125 = vmatprep.subr.mxu1 %v155_v1  ;;  %v106_v6 = vld [vmem:[#allocation6 + $0x70] sm:$0xff]  ;;  %v153_v9 = vld [vmem:[#allocation6 + $0x1e8] sm:$0xff]  ;;  %s1257_s30 = scalar_lea.vmem %s1049_s2, 2048  ;;  %p1262_p2 = scmp.lt.s32.totalorder %s1049_s2, %s1049_s2 }
  0x29   :  { %v139_v3 = vld [vmem:[#allocation6 + $0x178] sm:$0xff]  ;;  %1062 = vmatpush3.xpose.msra.mxu0 %v107_v2  ;;  %v138_v7 = vld [vmem:[#allocation6 + $0x170] sm:$0xff]  ;;  %v105_v10 = vld [vmem:[#allocation6 + $0x68] sm:$0xff]  ;;  %p1258_p1 = scmp.ne.s32.totalorder %s1049_s2, %s1257_s30  ;;  %p1263_p3 = scmp.lt.s32.totalorder %s1257_s30, %s1257_s30 }
  0x2a   :  { %1126 = vmatpush3.xpose.msra.mxu1 %v139_v3  ;;  %1063 = vmatprep.subr.mxu0 %v122_v4  ;;  %v137_v11 = vld [vmem:[#allocation6 + $0x168] sm:$0xff]  ;;  %v120_v12 = vld [vmem:[#allocation6 + $0xe0] sm:$0xff]  ;;  %v119_v16 = vld [vmem:[#allocation6 + $0xd8] sm:$0xff] }
  0x2b   :  { %1127 = vmatprep.subr.mxu1 %v154_v5  ;;  %v152_v13 = vld [vmem:[#allocation6 + $0x1e0] sm:$0xff]  ;;  %v151_v17 = vld [vmem:[#allocation6 + $0x1d8] sm:$0xff]  ;;  %v118_v20 = vld [vmem:[#allocation6 + $0xd0] sm:$0xff]  ;;  %p1264_p4 = por %p1263_p3, %p1262_p2 }
  0x2c   :  { %v104_v14 = vld [vmem:[#allocation6 + $0x60] sm:$0xff]  ;;  %v103_v18 = vld [vmem:[#allocation6 + $0x58] sm:$0xff]  ;;  %v150_v21 = vld [vmem:[#allocation6 + $0x1d0] sm:$0xff] }
  0x2d   :  { %1064 = vmatpush3.xpose.msra.mxu0 %v106_v6  ;;  %v136_v15 = vld [vmem:[#allocation6 + $0x160] sm:$0xff]  ;;  %v135_v19 = vld [vmem:[#allocation6 + $0x158] sm:$0xff]  ;;  %v102_v22 = vld [vmem:[#allocation6 + $0x50] sm:$0xff]  ;;  %p1265_p5 = pnand %p1264_p4, %p1258_p1 }
  0x2e   :  { %1128 = vmatpush3.xpose.msra.mxu1 %v138_v7  ;;  %1065 = vmatprep.subr.mxu0 %v121_v8  ;;  %v134_v23 = vld [vmem:[#allocation6 + $0x150] sm:$0xff]  ;;  %v117_v24 = vld [vmem:[#allocation6 + $0xc8] sm:$0xff]  ;;  %v1326_v26 = vld [vmem:[#allocation3] sm:$0xff] }
  0x2f   :  { %1129 = vmatprep.subr.mxu1 %v153_v9  ;;  %v149_v25 = vld [vmem:[#allocation6 + $0x1c8] sm:$0xff]  ;;  %v116_v29 = vld [vmem:[#allocation6 + $0xc0] sm:$0xff]  ;;  %1093 = vmatprep.mubr.f32.mxu0 %v1326_v26  ;;  %v115_v33 = vld [vmem:[#allocation6 + $0xb8] sm:$0xff] }
  0x30   :  { %v101_v27 = vld [vmem:[#allocation6 + $0x48] sm:$0xff]  ;;  %v148_v30 = vld [vmem:[#allocation6 + $0x1c0] sm:$0xff]  ;;  %1157 = vmatprep.mubr.f32.mxu1 %v1326_v26  ;;  %v147_v34 = vld [vmem:[#allocation6 + $0x1b8] sm:$0xff] }
  0x31   :  { %1066 = vmatpush3.xpose.msra.mxu0 %v105_v10  ;;  %v133_v28 = vld [vmem:[#allocation6 + $0x148] sm:$0xff]  ;;  %v100_v31 = vld [vmem:[#allocation6 + $0x40] sm:$0xff]  ;;  %v99_v35 = vld [vmem:[#allocation6 + $0x38] sm:$0xff] }
  0x32   :  { %1130 = vmatpush3.xpose.msra.mxu1 %v137_v11  ;;  %1067 = vmatprep.subr.mxu0 %v120_v12  ;;  %v132_v32 = vld [vmem:[#allocation6 + $0x140] sm:$0xff]  ;;  %v131_v36 = vld [vmem:[#allocation6 + $0x138] sm:$0xff]  ;;  %v114_v37 = vld [vmem:[#allocation6 + $0xb0] sm:$0xff] }
  0x33   :  { %1131 = vmatprep.subr.mxu1 %v152_v13  ;;  %v146_v38 = vld [vmem:[#allocation6 + $0x1b0] sm:$0xff]  ;;  %v113_v41 = vld [vmem:[#allocation6 + $0xa8] sm:$0xff]  ;;  %v112_v45 = vld [vmem:[#allocation6 + $0xa0] sm:$0xff] }
  0x34   :  { %v98_v39 = vld [vmem:[#allocation6 + $0x30] sm:$0xff]  ;;  %v145_v42 = vld [vmem:[#allocation6 + $0x1a8] sm:$0xff]  ;;  %v144_v46 = vld [vmem:[#allocation6 + $0x1a0] sm:$0xff] }
  0x35   :  { %1068 = vmatpush3.xpose.msra.mxu0 %v104_v14  ;;  %v130_v40 = vld [vmem:[#allocation6 + $0x130] sm:$0xff]  ;;  %v97_v43 = vld [vmem:[#allocation6 + $0x28] sm:$0xff]  ;;  %v96_v47 = vld [vmem:[#allocation6 + $0x20] sm:$0xff] }
  0x36   :  { %1132 = vmatpush3.xpose.msra.mxu1 %v136_v15  ;;  %1069 = vmatprep.subr.mxu0 %v119_v16  ;;  %v129_v44 = vld [vmem:[#allocation6 + $0x128] sm:$0xff]  ;;  %v128_v48 = vld [vmem:[#allocation6 + $0x120] sm:$0xff]  ;;  %v111_v49 = vld [vmem:[#allocation6 + $0x98] sm:$0xff] }
  0x37   :  { %1133 = vmatprep.subr.mxu1 %v151_v17  ;;  %v143_v50 = vld [vmem:[#allocation6 + $0x198] sm:$0xff]  ;;  %v110_v53 = vld [vmem:[#allocation6 + $0x90] sm:$0xff]  ;;  %v109_v57 = vld [vmem:[#allocation6 + $0x88] sm:$0xff] }
  0x38   :  { %v95_v51 = vld [vmem:[#allocation6 + $0x18] sm:$0xff]  ;;  %v142_v54 = vld [vmem:[#allocation6 + $0x190] sm:$0xff]  ;;  %v141_v58 = vld [vmem:[#allocation6 + $0x188] sm:$0xff] }
  0x39   :  { %1070 = vmatpush3.xpose.msra.mxu0 %v103_v18  ;;  %v127_v52 = vld [vmem:[#allocation6 + $0x118] sm:$0xff]  ;;  %v94_v55 = vld [vmem:[#allocation6 + $0x10] sm:$0xff]  ;;  %v93_v59 = vld [vmem:[#allocation6 + $0x8] sm:$0xff] }
  0x3a   :  { %1134 = vmatpush3.xpose.msra.mxu1 %v135_v19  ;;  %1071 = vmatprep.subr.mxu0 %v118_v20  ;;  %v126_v56 = vld [vmem:[#allocation6 + $0x110] sm:$0xff]  ;;  %v125_v60 = vld [vmem:[#allocation6 + $0x108] sm:$0xff]  ;;  %v108_v61 = vld [vmem:[#allocation6 + $0x80] sm:$0xff] }
  0x3b   :  { %1135 = vmatprep.subr.mxu1 %v150_v21  ;;  %v140_v62 = vld [vmem:[#allocation6 + $0x180] sm:$0xff]  ;;  %v683_v1 = vld [vmem:[#allocation8 + $0x1e8] sm:$0xff]  ;;  %v685_v2 = vld [vmem:[#allocation8 + $0x1f8] sm:$0xff] }
  0x3c   :  { %v92_v63 = vld [vmem:[#allocation6] sm:$0xff]  ;;  %v77_v3 = vld [vmem:[#allocation3 + $0x8] sm:$0xff]  ;;  %v684_v5 = vld [vmem:[#allocation8 + $0x1f0] sm:$0xff] }
  0x3d   :  { %1072 = vmatpush3.xpose.msra.mxu0 %v102_v22  ;;  %v124_v0 = vld [vmem:[#allocation6 + $0x100] sm:$0xff]  ;;  %v679_v6 = vld [vmem:[#allocation8 + $0x1c8] sm:$0xff]  ;;  %v681_v7 = vld [vmem:[#allocation8 + $0x1d8] sm:$0xff] }
  0x3e   :  { %1136 = vmatpush3.xpose.msra.mxu1 %v134_v23  ;;  %1073 = vmatprep.subr.mxu0 %v117_v24  ;;  %v682_v4 = vld [vmem:[#allocation8 + $0x1e0] sm:$0xff]  ;;  %v78_v8 = vld [vmem:[#allocation3 + $0x10] sm:$0xff]  ;;  %v675_v11 = vld [vmem:[#allocation8 + $0x1a8] sm:$0xff] }
  0x3f   :  { %1137 = vmatprep.subr.mxu1 %v149_v25  ;;  %v678_v9 = vld [vmem:[#allocation8 + $0x1c0] sm:$0xff]  ;;  %v680_v10 = vld [vmem:[#allocation8 + $0x1d0] sm:$0xff]  ;;  %v677_v12 = vld [vmem:[#allocation8 + $0x1b8] sm:$0xff] }
  0x40   :  { %v79_v13 = vld [vmem:[#allocation3 + $0x18] sm:$0xff]  ;;  %v674_v14 = vld [vmem:[#allocation8 + $0x1a0] sm:$0xff]  ;;  %v676_v15 = vld [vmem:[#allocation8 + $0x1b0] sm:$0xff] }
  0x41   :  { %1074 = vmatpush3.xpose.msra.mxu0 %v101_v27  ;;  %v671_v16 = vld [vmem:[#allocation8 + $0x188] sm:$0xff]  ;;  %v673_v17 = vld [vmem:[#allocation8 + $0x198] sm:$0xff]  ;;  %v80_v18 = vld [vmem:[#allocation3 + $0x20] sm:$0xff] }
  0x42   :  { %1138 = vmatpush3.xpose.msra.mxu1 %v133_v28  ;;  %1075 = vmatprep.subr.mxu0 %v116_v29  ;;  %v670_v19 = vld [vmem:[#allocation8 + $0x180] sm:$0xff]  ;;  %v672_v20 = vld [vmem:[#allocation8 + $0x190] sm:$0xff]  ;;  %v667_v21 = vld [vmem:[#allocation8 + $0x168] sm:$0xff] }
  0x43   :  { %1139 = vmatprep.subr.mxu1 %v148_v30  ;;  %v669_v22 = vld [vmem:[#allocation8 + $0x178] sm:$0xff]  ;;  %v81_v23 = vld [vmem:[#allocation3 + $0x28] sm:$0xff]  ;;  %v666_v24 = vld [vmem:[#allocation8 + $0x160] sm:$0xff] }
  0x44   :  { %v668_v25 = vld [vmem:[#allocation8 + $0x170] sm:$0xff]  ;;  %v665_v27 = vld [vmem:[#allocation8 + $0x158] sm:$0xff]  ;;  %v662_v29 = vld [vmem:[#allocation8 + $0x140] sm:$0xff] }
  0x45   :  { %1076 = vmatpush3.xpose.msra.mxu0 %v100_v31  ;;  %v82_v28 = vld [vmem:[#allocation3 + $0x30] sm:$0xff]  ;;  %v659_v31 = vld [vmem:[#allocation8 + $0x128] sm:$0xff] }
  0x46   :  { %1140 = vmatpush3.xpose.msra.mxu1 %v132_v32  ;;  %1077 = vmatprep.subr.mxu0 %v115_v33  ;;  %v664_v30 = vld [vmem:[#allocation8 + $0x150] sm:$0xff]  ;;  %v661_v32 = vld [vmem:[#allocation8 + $0x138] sm:$0xff] }
  0x47   :  { %1141 = vmatprep.subr.mxu1 %v147_v34  ;;  %v83_v33 = vld [vmem:[#allocation3 + $0x38] sm:$0xff]  ;;  %v658_v34 = vld [vmem:[#allocation8 + $0x120] sm:$0xff] }
  0x49   :  { %1078 = vmatpush3.xpose.msra.mxu0 %v99_v35  ;;  %v660_v35 = vld [vmem:[#allocation8 + $0x130] sm:$0xff] }
  0x4a   :  { %1142 = vmatpush3.xpose.msra.mxu1 %v131_v36  ;;  %1079 = vmatprep.subr.mxu0 %v114_v37  ;;  %v655_v36 = vld [vmem:[#allocation8 + $0x108] sm:$0xff]  ;;  %v657_v37 = vld [vmem:[#allocation8 + $0x118] sm:$0xff] }
  0x4b   :  { %1143 = vmatprep.subr.mxu1 %v146_v38  ;;  %v84_v38 = vld [vmem:[#allocation3 + $0x40] sm:$0xff] }
  0x4d   :  { %1080 = vmatpush3.xpose.msra.mxu0 %v98_v39  ;;  %v654_v39 = vld [vmem:[#allocation8 + $0x100] sm:$0xff] }
  0x4e   :  { %1144 = vmatpush3.xpose.msra.mxu1 %v130_v40  ;;  %1081 = vmatprep.subr.mxu0 %v113_v41  ;;  %v656_v40 = vld [vmem:[#allocation8 + $0x110] sm:$0xff]  ;;  %v651_v41 = vld [vmem:[#allocation8 + $0xe8] sm:$0xff] }
  0x4f   :  { %1145 = vmatprep.subr.mxu1 %v145_v42  ;;  %v653_v42 = vld [vmem:[#allocation8 + $0xf8] sm:$0xff] }
  0x51   :  { %1082 = vmatpush3.xpose.msra.mxu0 %v97_v43  ;;  %v85_v43 = vld [vmem:[#allocation3 + $0x48] sm:$0xff] }
  0x52   :  { %1146 = vmatpush3.xpose.msra.mxu1 %v129_v44  ;;  %1083 = vmatprep.subr.mxu0 %v112_v45  ;;  %v650_v44 = vld [vmem:[#allocation8 + $0xe0] sm:$0xff]  ;;  %v652_v45 = vld [vmem:[#allocation8 + $0xf0] sm:$0xff] }
  0x53   :  { %1147 = vmatprep.subr.mxu1 %v144_v46  ;;  %v647_v46 = vld [vmem:[#allocation8 + $0xc8] sm:$0xff] }
  0x55   :  { %1084 = vmatpush3.xpose.msra.mxu0 %v96_v47  ;;  %v649_v47 = vld [vmem:[#allocation8 + $0xd8] sm:$0xff] }
  0x56   :  { %1148 = vmatpush3.xpose.msra.mxu1 %v128_v48  ;;  %1085 = vmatprep.subr.mxu0 %v111_v49  ;;  %v86_v48 = vld [vmem:[#allocation3 + $0x50] sm:$0xff]  ;;  %v646_v49 = vld [vmem:[#allocation8 + $0xc0] sm:$0xff] }
  0x57   :  { %1149 = vmatprep.subr.mxu1 %v143_v50  ;;  %v648_v50 = vld [vmem:[#allocation8 + $0xd0] sm:$0xff] }
  0x59   :  { %1086 = vmatpush3.xpose.msra.mxu0 %v95_v51  ;;  %v643_v51 = vld [vmem:[#allocation8 + $0xa8] sm:$0xff] }
  0x5a   :  { %1150 = vmatpush3.xpose.msra.mxu1 %v127_v52  ;;  %1087 = vmatprep.subr.mxu0 %v110_v53  ;;  %v645_v52 = vld [vmem:[#allocation8 + $0xb8] sm:$0xff] }
  0x5b   :  { %1151 = vmatprep.subr.mxu1 %v142_v54  ;;  %v87_v53 = vld [vmem:[#allocation3 + $0x58] sm:$0xff]  ;;  %v642_v54 = vld [vmem:[#allocation8 + $0xa0] sm:$0xff] }
  0x5d   :  { %1088 = vmatpush3.xpose.msra.mxu0 %v94_v55  ;;  %v644_v55 = vld [vmem:[#allocation8 + $0xb0] sm:$0xff] }
  0x5e   :  { %1152 = vmatpush3.xpose.msra.mxu1 %v126_v56  ;;  %1089 = vmatprep.subr.mxu0 %v109_v57  ;;  %v639_v56 = vld [vmem:[#allocation8 + $0x88] sm:$0xff]  ;;  %v641_v57 = vld [vmem:[#allocation8 + $0x98] sm:$0xff] }
  0x5f   :  { %1153 = vmatprep.subr.mxu1 %v141_v58  ;;  %v88_v58 = vld [vmem:[#allocation3 + $0x60] sm:$0xff] }
  0x61   :  { %1090 = vmatpush3.xpose.msra.mxu0 %v93_v59  ;;  %v638_v59 = vld [vmem:[#allocation8 + $0x80] sm:$0xff] }
  0x62   :  { %1154 = vmatpush3.xpose.msra.mxu1 %v125_v60  ;;  %1091 = vmatprep.subr.mxu0 %v108_v61  ;;  %v640_v60 = vld [vmem:[#allocation8 + $0x90] sm:$0xff]  ;;  %v635_v61 = vld [vmem:[#allocation8 + $0x68] sm:$0xff] }
  0x63   :  { %1155 = vmatprep.subr.mxu1 %v140_v62  ;;  %v637_v62 = vld [vmem:[#allocation8 + $0x78] sm:$0xff] }
  0x65   :  { %1092 = vmatpush3.xpose.msra.mxu0 %v92_v63  ;;  %v89_v63 = vld [vmem:[#allocation3 + $0x68] sm:$0xff] }
  0x66   :  { %1156 = vmatpush3.xpose.msra.mxu1 %v124_v0  ;;  %686 = vmatprep.subr.mxu0 %v683_v1  ;;  %v634_v0 = vld [vmem:[#allocation8 + $0x60] sm:$0xff]  ;;  %v636_v1 = vld [vmem:[#allocation8 + $0x70] sm:$0xff] }
  0x67   :  { %831 = vmatprep.subr.mxu1 %v685_v2  ;;  %v631_v2 = vld [vmem:[#allocation8 + $0x48] sm:$0xff] }
  0x68   :  { %1094 = vmatmul.mubr.f32.vlgmr.msra.gmra.mxu0 %v1326_v26 }
  0x69   :  { %1158 = vmatmul.mubr.f32.vlgmr.msra.gmra.mxu1 %v1326_v26  ;;  %1095 = vmatprep.mubr.f32.mxu0 %v77_v3  ;;  %v663_v26 = vld [vmem:[#allocation8 + $0x148] sm:$0xff] }
  0x6a   :  { %1159 = vmatprep.mubr.f32.mxu1 %v77_v3  ;;  %687 = vmatpush1.xpose.msra.mxu0 %v682_v4  ;;  %v90_v4 = vld [vmem:[#allocation3 + $0x70] sm:$0xff] }
  0x6b   :  { %832 = vmatpush1.xpose.msra.mxu1 %v684_v5  ;;  %688 = vmatprep.subr.mxu0 %v679_v6  ;;  %v630_v5 = vld [vmem:[#allocation8 + $0x40] sm:$0xff]  ;;  %v632_v6 = vld [vmem:[#allocation8 + $0x50] sm:$0xff] }
  0x6c   :  { %833 = vmatprep.subr.mxu1 %v681_v7  ;;  %1096 = vmatmul.mubr.f32.gmra.mxu0 %v77_v3  ;;  %v627_v7 = vld [vmem:[#allocation8 + $0x28] sm:$0xff] }
  0x6d   :  { %1160 = vmatmul.mubr.f32.gmra.mxu1 %v77_v3  ;;  %1097 = vmatprep.mubr.f32.mxu0 %v78_v8  ;;  %v633_v3 = vld [vmem:[#allocation8 + $0x58] sm:$0xff] }
  0x6e   :  { %1161 = vmatprep.mubr.f32.mxu1 %v78_v8  ;;  %689 = vmatpush1.xpose.msra.mxu0 %v678_v9  ;;  %v91_v9 = vld [vmem:[#allocation3 + $0x78] sm:$0xff] }
  0x6f   :  { %834 = vmatpush1.xpose.msra.mxu1 %v680_v10  ;;  %690 = vmatprep.subr.mxu0 %v675_v11  ;;  %v626_v10 = vld [vmem:[#allocation8 + $0x20] sm:$0xff]  ;;  %v628_v11 = vld [vmem:[#allocation8 + $0x30] sm:$0xff] }
  0x70   :  { %835 = vmatprep.subr.mxu1 %v677_v12  ;;  %1098 = vmatmul.mubr.f32.gmra.mxu0 %v78_v8  ;;  %v623_v12 = vld [vmem:[#allocation8 + $0x8] sm:$0xff] }
  0x71   :  { %1162 = vmatmul.mubr.f32.gmra.mxu1 %v78_v8  ;;  %1099 = vmatprep.mubr.f32.mxu0 %v79_v13  ;;  %v629_v8 = vld [vmem:[#allocation8 + $0x38] sm:$0xff] }
  0x72   :  { %1163 = vmatprep.mubr.f32.mxu1 %v79_v13  ;;  %691 = vmatpush1.xpose.msra.mxu0 %v674_v14  ;;  %v622_v14 = vld [vmem:[#allocation8] sm:$0xff] }
  0x73   :  { %836 = vmatpush1.xpose.msra.mxu1 %v676_v15  ;;  %692 = vmatprep.subr.mxu0 %v671_v16  ;;  %v624_v15 = vld [vmem:[#allocation8 + $0x10] sm:$0xff] }
  0x74   :  { %837 = vmatprep.subr.mxu1 %v673_v17  ;;  %1100 = vmatmul.mubr.f32.gmra.mxu0 %v79_v13 }
  0x75   :  { %1164 = vmatmul.mubr.f32.gmra.mxu1 %v79_v13  ;;  %1101 = vmatprep.mubr.f32.mxu0 %v80_v18  ;;  %v625_v13 = vld [vmem:[#allocation8 + $0x18] sm:$0xff] }
  0x76   :  { %1165 = vmatprep.mubr.f32.mxu1 %v80_v18  ;;  %693 = vmatpush1.xpose.msra.mxu0 %v670_v19 }
  0x77   :  { %838 = vmatpush1.xpose.msra.mxu1 %v672_v20  ;;  %694 = vmatprep.subr.mxu0 %v667_v21 }
  0x78   :  { %839 = vmatprep.subr.mxu1 %v669_v22  ;;  %1102 = vmatmul.mubr.f32.gmra.mxu0 %v80_v18 }
  0x79   :  { %1166 = vmatmul.mubr.f32.gmra.mxu1 %v80_v18  ;;  %1103 = vmatprep.mubr.f32.mxu0 %v81_v23 }
  0x7a   :  { %1167 = vmatprep.mubr.f32.mxu1 %v81_v23  ;;  %695 = vmatpush1.xpose.msra.mxu0 %v666_v24 }
  0x7b   :  { %840 = vmatpush1.xpose.msra.mxu1 %v668_v25  ;;  %696 = vmatprep.subr.mxu0 %v663_v26 }
  0x7c   :  { %841 = vmatprep.subr.mxu1 %v665_v27  ;;  %1104 = vmatmul.mubr.f32.gmra.mxu0 %v81_v23 }
  0x7d   :  { %1168 = vmatmul.mubr.f32.gmra.mxu1 %v81_v23  ;;  %1105 = vmatprep.mubr.f32.mxu0 %v82_v28 }
  0x7e   :  { %1169 = vmatprep.mubr.f32.mxu1 %v82_v28  ;;  %697 = vmatpush1.xpose.msra.mxu0 %v662_v29 }
  0x7f   :  { %842 = vmatpush1.xpose.msra.mxu1 %v664_v30  ;;  %698 = vmatprep.subr.mxu0 %v659_v31 }
  0x80   :  { %843 = vmatprep.subr.mxu1 %v661_v32  ;;  %1106 = vmatmul.mubr.f32.gmra.mxu0 %v82_v28 }
  0x81   :  { %1170 = vmatmul.mubr.f32.gmra.mxu1 %v82_v28  ;;  %1107 = vmatprep.mubr.f32.mxu0 %v83_v33 }
  0x82   :  { %1171 = vmatprep.mubr.f32.mxu1 %v83_v33  ;;  %699 = vmatpush1.xpose.msra.mxu0 %v658_v34 }
  0x83   :  { %844 = vmatpush1.xpose.msra.mxu1 %v660_v35  ;;  %700 = vmatprep.subr.mxu0 %v655_v36 }
  0x84   :  { %845 = vmatprep.subr.mxu1 %v657_v37  ;;  %1108 = vmatmul.mubr.f32.gmra.mxu0 %v83_v33 }
  0x85   :  { %1172 = vmatmul.mubr.f32.gmra.mxu1 %v83_v33  ;;  %1109 = vmatprep.mubr.f32.mxu0 %v84_v38 }
  0x86   :  { %1173 = vmatprep.mubr.f32.mxu1 %v84_v38  ;;  %701 = vmatpush1.xpose.msra.mxu0 %v654_v39 }
  0x87   :  { %846 = vmatpush1.xpose.msra.mxu1 %v656_v40  ;;  %702 = vmatprep.subr.mxu0 %v651_v41 }
  0x88   :  { %847 = vmatprep.subr.mxu1 %v653_v42  ;;  %1110 = vmatmul.mubr.f32.gmra.mxu0 %v84_v38 }
  0x89   :  { %1174 = vmatmul.mubr.f32.gmra.mxu1 %v84_v38  ;;  %1111 = vmatprep.mubr.f32.mxu0 %v85_v43 }
  0x8a   :  { %1175 = vmatprep.mubr.f32.mxu1 %v85_v43  ;;  %703 = vmatpush1.xpose.msra.mxu0 %v650_v44 }
  0x8b   :  { %848 = vmatpush1.xpose.msra.mxu1 %v652_v45  ;;  %704 = vmatprep.subr.mxu0 %v647_v46 }
  0x8c   :  { %849 = vmatprep.subr.mxu1 %v649_v47  ;;  %1112 = vmatmul.mubr.f32.gmra.mxu0 %v85_v43 }
  0x8d   :  { %1176 = vmatmul.mubr.f32.gmra.mxu1 %v85_v43  ;;  %1113 = vmatprep.mubr.f32.mxu0 %v86_v48 }
  0x8e   :  { %1177 = vmatprep.mubr.f32.mxu1 %v86_v48  ;;  %705 = vmatpush1.xpose.msra.mxu0 %v646_v49 }
  0x8f   :  { %850 = vmatpush1.xpose.msra.mxu1 %v648_v50  ;;  %706 = vmatprep.subr.mxu0 %v643_v51 }
  0x90   :  { %851 = vmatprep.subr.mxu1 %v645_v52  ;;  %1114 = vmatmul.mubr.f32.gmra.mxu0 %v86_v48 }
  0x91   :  { %1178 = vmatmul.mubr.f32.gmra.mxu1 %v86_v48  ;;  %1115 = vmatprep.mubr.f32.mxu0 %v87_v53 }
  0x92   :  { %1179 = vmatprep.mubr.f32.mxu1 %v87_v53  ;;  %707 = vmatpush1.xpose.msra.mxu0 %v642_v54 }
  0x93   :  { %852 = vmatpush1.xpose.msra.mxu1 %v644_v55  ;;  %708 = vmatprep.subr.mxu0 %v639_v56 }
  0x94   :  { %853 = vmatprep.subr.mxu1 %v641_v57  ;;  %1116 = vmatmul.mubr.f32.gmra.mxu0 %v87_v53 }
  0x95   :  { %1180 = vmatmul.mubr.f32.gmra.mxu1 %v87_v53  ;;  %1117 = vmatprep.mubr.f32.mxu0 %v88_v58 }
  0x96   :  { %1181 = vmatprep.mubr.f32.mxu1 %v88_v58  ;;  %709 = vmatpush1.xpose.msra.mxu0 %v638_v59 }
  0x97   :  { %854 = vmatpush1.xpose.msra.mxu1 %v640_v60  ;;  %710 = vmatprep.subr.mxu0 %v635_v61 }
  0x98   :  { %855 = vmatprep.subr.mxu1 %v637_v62  ;;  %1118 = vmatmul.mubr.f32.gmra.mxu0 %v88_v58 }
  0x99   :  { %1182 = vmatmul.mubr.f32.gmra.mxu1 %v88_v58  ;;  %1119 = vmatprep.mubr.f32.mxu0 %v89_v63 }
  0x9a   :  { %1183 = vmatprep.mubr.f32.mxu1 %v89_v63  ;;  %711 = vmatpush1.xpose.msra.mxu0 %v634_v0 }
  0x9b   :  { %856 = vmatpush1.xpose.msra.mxu1 %v636_v1  ;;  %712 = vmatprep.subr.mxu0 %v631_v2 }
  0x9c   :  { %857 = vmatprep.subr.mxu1 %v633_v3  ;;  %1120 = vmatmul.mubr.f32.gmra.mxu0 %v89_v63 }
  0x9d   :  { %1184 = vmatmul.mubr.f32.gmra.mxu1 %v89_v63  ;;  %1121 = vmatprep.mubr.f32.mxu0 %v90_v4 }
  0x9e   :  { %1185 = vmatprep.mubr.f32.mxu1 %v90_v4  ;;  %713 = vmatpush1.xpose.msra.mxu0 %v630_v5 }
  0x9f   :  { %858 = vmatpush1.xpose.msra.mxu1 %v632_v6  ;;  %714 = vmatprep.subr.mxu0 %v627_v7 }
  0xa0   :  { %859 = vmatprep.subr.mxu1 %v629_v8  ;;  %1122 = vmatmul.mubr.f32.gmra.mxu0 %v90_v4 }
  0xa1   :  { %1186 = vmatmul.mubr.f32.gmra.mxu1 %v90_v4  ;;  %1123 = vmatprep.mubr.f32.mxu0 %v91_v9 }
  0xa2   :  { %1187 = vmatprep.mubr.f32.mxu1 %v91_v9  ;;  %715 = vmatpush1.xpose.msra.mxu0 %v626_v10 }
  0xa3   :  { %860 = vmatpush1.xpose.msra.mxu1 %v628_v11  ;;  %716 = vmatprep.subr.mxu0 %v623_v12 }
  0xa4   :  { %1124 = vmatmul.mubr.f32.gmra.mxu0 %v91_v9  ;;  %861 = vmatprep.subr.mxu1 %v625_v13 }
  0xa5   :  { %1188 = vmatmul.mubr.f32.gmra.mxu1 %v91_v9 }
  0xa6   :  { %717 = vmatpush1.xpose.msra.mxu0 %v622_v14 }
  0xa7   :  { %862 = vmatpush1.xpose.msra.mxu1 %v624_v15 }
 0x128   :  { %v222_v16 = vpop.f32.mrf.mxu0 }
 0x129   :  { %v383_v17 = vpop.f32.mrf.mxu1  ;;  %v478_v18 = vmax.f32 %v222_v16, 0.0 }
 0x12a   :  { %v480_v19 = vmax.f32 %v383_v17, 0.0  ;;  %v224_v20 = vpop.f32.mrf.mxu0 }
 0x12b   :  { %v385_v21 = vpop.f32.mrf.mxu1  ;;  %v479_v22 = vmax.f32 %v224_v20, 0.0  ;;  %v542_v28 = vmul.f32 %v478_v18, %v478_v18 }
 0x12c   :  { %v481_v23 = vmax.f32 %v385_v21, 0.0  ;;  %v228_v24 = vpop.f32.mrf.mxu0  ;;  %v544_v29 = vmul.f32 %v480_v19, %v480_v19 }
 0x12d   :  { %v389_v25 = vpop.f32.mrf.mxu1  ;;  %v543_v26 = vmul.f32 %v479_v22, %v479_v22  ;;  %v482_v30 = vmax.f32 %v228_v24, 0.0 }
 0x12e   :  { %v545_v27 = vmul.f32 %v481_v23, %v481_v23  ;;  %v484_v31 = vmax.f32 %v389_v25, 0.0  ;;  %v230_v32 = vpop.f32.mrf.mxu0 }
 0x12f   :  { %v391_v33 = vpop.f32.mrf.mxu1  ;;  %v483_v34 = vmax.f32 %v230_v32, 0.0  ;;  %750 = vmatprep.mubr.f32.mxu0 %v543_v26  ;;  %v546_v40 = vmul.f32 %v482_v30, %v482_v30 }
 0x130   :  { %v485_v35 = vmax.f32 %v391_v33, 0.0  ;;  %895 = vmatprep.mubr.f32.mxu1 %v545_v27  ;;  %v234_v36 = vpop.f32.mrf.mxu0  ;;  %751 = vmatmul.mubr.f32.vlgmr.msra.gmra.mxu0 %v542_v28  ;;  %v548_v41 = vmul.f32 %v484_v31, %v484_v31 }
 0x131   :  { %v395_v37 = vpop.f32.mrf.mxu1  ;;  %896 = vmatmul.mubr.f32.vlgmr.msra.gmra.mxu1 %v544_v29  ;;  %v547_v38 = vmul.f32 %v483_v34, %v483_v34  ;;  %v486_v42 = vmax.f32 %v234_v36, 0.0 }
 0x132   :  { %v549_v39 = vmul.f32 %v485_v35, %v485_v35  ;;  %v488_v43 = vmax.f32 %v395_v37, 0.0  ;;  %v236_v44 = vpop.f32.mrf.mxu0 }
 0x133   :  { %v397_v45 = vpop.f32.mrf.mxu1  ;;  %v487_v46 = vmax.f32 %v236_v44, 0.0  ;;  %755 = vmatprep.mubr.f32.mxu0 %v547_v38  ;;  %v550_v52 = vmul.f32 %v486_v42, %v486_v42 }
 0x134   :  { %v489_v47 = vmax.f32 %v397_v45, 0.0  ;;  %900 = vmatprep.mubr.f32.mxu1 %v549_v39  ;;  %v240_v48 = vpop.f32.mrf.mxu0  ;;  %756 = vmatmul.mubr.f32.gmra.mxu0 %v546_v40  ;;  %v552_v53 = vmul.f32 %v488_v43, %v488_v43 }
 0x135   :  { %v401_v49 = vpop.f32.mrf.mxu1  ;;  %901 = vmatmul.mubr.f32.gmra.mxu1 %v548_v41  ;;  %v551_v50 = vmul.f32 %v487_v46, %v487_v46  ;;  %v490_v54 = vmax.f32 %v240_v48, 0.0 }
 0x136   :  { %v553_v51 = vmul.f32 %v489_v47, %v489_v47  ;;  %v492_v55 = vmax.f32 %v401_v49, 0.0  ;;  %v242_v56 = vpop.f32.mrf.mxu0 }
 0x137   :  { %v403_v57 = vpop.f32.mrf.mxu1  ;;  %v491_v58 = vmax.f32 %v242_v56, 0.0  ;;  %760 = vmatprep.mubr.f32.mxu0 %v551_v50  ;;  %v554_v0 = vmul.f32 %v490_v54, %v490_v54 }
 0x138   :  { %v493_v59 = vmax.f32 %v403_v57, 0.0  ;;  %905 = vmatprep.mubr.f32.mxu1 %v553_v51  ;;  %v246_v60 = vpop.f32.mrf.mxu0  ;;  %761 = vmatmul.mubr.f32.gmra.mxu0 %v550_v52  ;;  %v556_v1 = vmul.f32 %v492_v55, %v492_v55 }
 0x139   :  { %v407_v61 = vpop.f32.mrf.mxu1  ;;  %906 = vmatmul.mubr.f32.gmra.mxu1 %v552_v53  ;;  %v555_v62 = vmul.f32 %v491_v58, %v491_v58  ;;  %v494_v2 = vmax.f32 %v246_v60, 0.0 }
 0x13a   :  { %v557_v63 = vmul.f32 %v493_v59, %v493_v59  ;;  %v496_v3 = vmax.f32 %v407_v61, 0.0  ;;  %v248_v4 = vpop.f32.mrf.mxu0 }
 0x13b   :  { %v409_v5 = vpop.f32.mrf.mxu1  ;;  %v495_v6 = vmax.f32 %v248_v4, 0.0  ;;  %765 = vmatprep.mubr.f32.mxu0 %v555_v62  ;;  %v558_v12 = vmul.f32 %v494_v2, %v494_v2 }
 0x13c   :  { %v497_v7 = vmax.f32 %v409_v5, 0.0  ;;  %910 = vmatprep.mubr.f32.mxu1 %v557_v63  ;;  %v252_v8 = vpop.f32.mrf.mxu0  ;;  %766 = vmatmul.mubr.f32.gmra.mxu0 %v554_v0  ;;  %v560_v13 = vmul.f32 %v496_v3, %v496_v3 }
 0x13d   :  { %v413_v9 = vpop.f32.mrf.mxu1  ;;  %911 = vmatmul.mubr.f32.gmra.mxu1 %v556_v1  ;;  %v559_v10 = vmul.f32 %v495_v6, %v495_v6  ;;  %v498_v14 = vmax.f32 %v252_v8, 0.0 }
 0x13e   :  { %v561_v11 = vmul.f32 %v497_v7, %v497_v7  ;;  %v500_v15 = vmax.f32 %v413_v9, 0.0  ;;  %v254_v16 = vpop.f32.mrf.mxu0 }
 0x13f   :  { %v415_v17 = vpop.f32.mrf.mxu1  ;;  %v499_v18 = vmax.f32 %v254_v16, 0.0  ;;  %770 = vmatprep.mubr.f32.mxu0 %v559_v10  ;;  %v562_v24 = vmul.f32 %v498_v14, %v498_v14 }
 0x140   :  { %v501_v19 = vmax.f32 %v415_v17, 0.0  ;;  %915 = vmatprep.mubr.f32.mxu1 %v561_v11  ;;  %v258_v20 = vpop.f32.mrf.mxu0  ;;  %771 = vmatmul.mubr.f32.gmra.mxu0 %v558_v12  ;;  %v564_v25 = vmul.f32 %v500_v15, %v500_v15 }
 0x141   :  { %v419_v21 = vpop.f32.mrf.mxu1  ;;  %916 = vmatmul.mubr.f32.gmra.mxu1 %v560_v13  ;;  %v563_v22 = vmul.f32 %v499_v18, %v499_v18  ;;  %v502_v26 = vmax.f32 %v258_v20, 0.0 }
 0x142   :  { %v565_v23 = vmul.f32 %v501_v19, %v501_v19  ;;  %v504_v27 = vmax.f32 %v419_v21, 0.0  ;;  %v260_v28 = vpop.f32.mrf.mxu0 }
 0x143   :  { %v421_v29 = vpop.f32.mrf.mxu1  ;;  %v503_v30 = vmax.f32 %v260_v28, 0.0  ;;  %775 = vmatprep.mubr.f32.mxu0 %v563_v22  ;;  %v566_v36 = vmul.f32 %v502_v26, %v502_v26 }
 0x144   :  { %v505_v31 = vmax.f32 %v421_v29, 0.0  ;;  %920 = vmatprep.mubr.f32.mxu1 %v565_v23  ;;  %v264_v32 = vpop.f32.mrf.mxu0  ;;  %776 = vmatmul.mubr.f32.gmra.mxu0 %v562_v24  ;;  %v568_v37 = vmul.f32 %v504_v27, %v504_v27 }
 0x145   :  { %v425_v33 = vpop.f32.mrf.mxu1  ;;  %921 = vmatmul.mubr.f32.gmra.mxu1 %v564_v25  ;;  %v567_v34 = vmul.f32 %v503_v30, %v503_v30  ;;  %v506_v38 = vmax.f32 %v264_v32, 0.0 }
 0x146   :  { %v569_v35 = vmul.f32 %v505_v31, %v505_v31  ;;  %v508_v39 = vmax.f32 %v425_v33, 0.0  ;;  %v266_v40 = vpop.f32.mrf.mxu0 }
 0x147   :  { %v427_v41 = vpop.f32.mrf.mxu1  ;;  %v507_v42 = vmax.f32 %v266_v40, 0.0  ;;  %780 = vmatprep.mubr.f32.mxu0 %v567_v34  ;;  %v570_v48 = vmul.f32 %v506_v38, %v506_v38 }
 0x148   :  { %v509_v43 = vmax.f32 %v427_v41, 0.0  ;;  %925 = vmatprep.mubr.f32.mxu1 %v569_v35  ;;  %v270_v44 = vpop.f32.mrf.mxu0  ;;  %781 = vmatmul.mubr.f32.gmra.mxu0 %v566_v36  ;;  %v572_v49 = vmul.f32 %v508_v39, %v508_v39 }
 0x149   :  { %v431_v45 = vpop.f32.mrf.mxu1  ;;  %926 = vmatmul.mubr.f32.gmra.mxu1 %v568_v37  ;;  %v571_v46 = vmul.f32 %v507_v42, %v507_v42  ;;  %v510_v50 = vmax.f32 %v270_v44, 0.0 }
 0x14a   :  { %v573_v47 = vmul.f32 %v509_v43, %v509_v43  ;;  %v512_v51 = vmax.f32 %v431_v45, 0.0  ;;  %v272_v52 = vpop.f32.mrf.mxu0 }
 0x14b   :  { %v433_v53 = vpop.f32.mrf.mxu1  ;;  %v511_v54 = vmax.f32 %v272_v52, 0.0  ;;  %785 = vmatprep.mubr.f32.mxu0 %v571_v46  ;;  %v574_v60 = vmul.f32 %v510_v50, %v510_v50 }
 0x14c   :  { %v513_v55 = vmax.f32 %v433_v53, 0.0  ;;  %930 = vmatprep.mubr.f32.mxu1 %v573_v47  ;;  %v276_v56 = vpop.f32.mrf.mxu0  ;;  %786 = vmatmul.mubr.f32.gmra.mxu0 %v570_v48  ;;  %v576_v61 = vmul.f32 %v512_v51, %v512_v51 }
 0x14d   :  { %v437_v57 = vpop.f32.mrf.mxu1  ;;  %931 = vmatmul.mubr.f32.gmra.mxu1 %v572_v49  ;;  %v575_v58 = vmul.f32 %v511_v54, %v511_v54  ;;  %v514_v62 = vmax.f32 %v276_v56, 0.0 }
 0x14e   :  { %v577_v59 = vmul.f32 %v513_v55, %v513_v55  ;;  %v516_v63 = vmax.f32 %v437_v57, 0.0  ;;  %v278_v0 = vpop.f32.mrf.mxu0 }
 0x14f   :  { %v439_v1 = vpop.f32.mrf.mxu1  ;;  %v515_v2 = vmax.f32 %v278_v0, 0.0  ;;  %790 = vmatprep.mubr.f32.mxu0 %v575_v58  ;;  %v578_v8 = vmul.f32 %v514_v62, %v514_v62 }
 0x150   :  { %v517_v3 = vmax.f32 %v439_v1, 0.0  ;;  %935 = vmatprep.mubr.f32.mxu1 %v577_v59  ;;  %v282_v4 = vpop.f32.mrf.mxu0  ;;  %791 = vmatmul.mubr.f32.gmra.mxu0 %v574_v60  ;;  %v580_v9 = vmul.f32 %v516_v63, %v516_v63 }
 0x151   :  { %v443_v5 = vpop.f32.mrf.mxu1  ;;  %936 = vmatmul.mubr.f32.gmra.mxu1 %v576_v61  ;;  %v579_v6 = vmul.f32 %v515_v2, %v515_v2  ;;  %v518_v10 = vmax.f32 %v282_v4, 0.0 }
 0x152   :  { %v581_v7 = vmul.f32 %v517_v3, %v517_v3  ;;  %v520_v11 = vmax.f32 %v443_v5, 0.0  ;;  %v284_v12 = vpop.f32.mrf.mxu0 }
 0x153   :  { %v445_v13 = vpop.f32.mrf.mxu1  ;;  %v519_v14 = vmax.f32 %v284_v12, 0.0  ;;  %795 = vmatprep.mubr.f32.mxu0 %v579_v6  ;;  %v582_v20 = vmul.f32 %v518_v10, %v518_v10 }
 0x154   :  { %v521_v15 = vmax.f32 %v445_v13, 0.0  ;;  %940 = vmatprep.mubr.f32.mxu1 %v581_v7  ;;  %v288_v16 = vpop.f32.mrf.mxu0  ;;  %796 = vmatmul.mubr.f32.gmra.mxu0 %v578_v8  ;;  %v584_v21 = vmul.f32 %v520_v11, %v520_v11 }
 0x155   :  { %v449_v17 = vpop.f32.mrf.mxu1  ;;  %941 = vmatmul.mubr.f32.gmra.mxu1 %v580_v9  ;;  %v583_v18 = vmul.f32 %v519_v14, %v519_v14  ;;  %v522_v22 = vmax.f32 %v288_v16, 0.0 }
 0x156   :  { %v585_v19 = vmul.f32 %v521_v15, %v521_v15  ;;  %v524_v23 = vmax.f32 %v449_v17, 0.0  ;;  %v290_v24 = vpop.f32.mrf.mxu0 }
 0x157   :  { %v451_v25 = vpop.f32.mrf.mxu1  ;;  %v523_v26 = vmax.f32 %v290_v24, 0.0  ;;  %800 = vmatprep.mubr.f32.mxu0 %v583_v18  ;;  %v586_v32 = vmul.f32 %v522_v22, %v522_v22 }
 0x158   :  { %v525_v27 = vmax.f32 %v451_v25, 0.0  ;;  %945 = vmatprep.mubr.f32.mxu1 %v585_v19  ;;  %v294_v28 = vpop.f32.mrf.mxu0  ;;  %801 = vmatmul.mubr.f32.gmra.mxu0 %v582_v20  ;;  %v588_v33 = vmul.f32 %v524_v23, %v524_v23 }
 0x159   :  { %v455_v29 = vpop.f32.mrf.mxu1  ;;  %946 = vmatmul.mubr.f32.gmra.mxu1 %v584_v21  ;;  %v587_v30 = vmul.f32 %v523_v26, %v523_v26  ;;  %v526_v34 = vmax.f32 %v294_v28, 0.0 }
 0x15a   :  { %v589_v31 = vmul.f32 %v525_v27, %v525_v27  ;;  %v528_v35 = vmax.f32 %v455_v29, 0.0  ;;  %v296_v36 = vpop.f32.mrf.mxu0 }
 0x15b   :  { %v457_v37 = vpop.f32.mrf.mxu1  ;;  %v527_v38 = vmax.f32 %v296_v36, 0.0  ;;  %805 = vmatprep.mubr.f32.mxu0 %v587_v30  ;;  %v590_v44 = vmul.f32 %v526_v34, %v526_v34 }
 0x15c   :  { %v529_v39 = vmax.f32 %v457_v37, 0.0  ;;  %950 = vmatprep.mubr.f32.mxu1 %v589_v31  ;;  %v300_v40 = vpop.f32.mrf.mxu0  ;;  %806 = vmatmul.mubr.f32.gmra.mxu0 %v586_v32  ;;  %v592_v45 = vmul.f32 %v528_v35, %v528_v35 }
 0x15d   :  { %v461_v41 = vpop.f32.mrf.mxu1  ;;  %951 = vmatmul.mubr.f32.gmra.mxu1 %v588_v33  ;;  %v591_v42 = vmul.f32 %v527_v38, %v527_v38  ;;  %v530_v46 = vmax.f32 %v300_v40, 0.0 }
 0x15e   :  { %v593_v43 = vmul.f32 %v529_v39, %v529_v39  ;;  %v532_v47 = vmax.f32 %v461_v41, 0.0  ;;  %v302_v48 = vpop.f32.mrf.mxu0 }
 0x15f   :  { %v463_v49 = vpop.f32.mrf.mxu1  ;;  %v531_v50 = vmax.f32 %v302_v48, 0.0  ;;  %810 = vmatprep.mubr.f32.mxu0 %v591_v42  ;;  %v594_v56 = vmul.f32 %v530_v46, %v530_v46 }
 0x160   :  { %v533_v51 = vmax.f32 %v463_v49, 0.0  ;;  %955 = vmatprep.mubr.f32.mxu1 %v593_v43  ;;  %v306_v52 = vpop.f32.mrf.mxu0  ;;  %811 = vmatmul.mubr.f32.gmra.mxu0 %v590_v44  ;;  %v596_v57 = vmul.f32 %v532_v47, %v532_v47 }
 0x161   :  { %v467_v53 = vpop.f32.mrf.mxu1  ;;  %956 = vmatmul.mubr.f32.gmra.mxu1 %v592_v45  ;;  %v595_v54 = vmul.f32 %v531_v50, %v531_v50  ;;  %v534_v58 = vmax.f32 %v306_v52, 0.0 }
 0x162   :  { %v597_v55 = vmul.f32 %v533_v51, %v533_v51  ;;  %v536_v59 = vmax.f32 %v467_v53, 0.0  ;;  %v308_v60 = vpop.f32.mrf.mxu0 }
 0x163   :  { %v469_v61 = vpop.f32.mrf.mxu1  ;;  %v535_v62 = vmax.f32 %v308_v60, 0.0  ;;  %815 = vmatprep.mubr.f32.mxu0 %v595_v54  ;;  %v598_v4 = vmul.f32 %v534_v58, %v534_v58 }
 0x164   :  { %v537_v63 = vmax.f32 %v469_v61, 0.0  ;;  %960 = vmatprep.mubr.f32.mxu1 %v597_v55  ;;  %v312_v0 = vpop.f32.mrf.mxu0  ;;  %816 = vmatmul.mubr.f32.gmra.mxu0 %v594_v56  ;;  %v600_v5 = vmul.f32 %v536_v59, %v536_v59 }
 0x165   :  { %v473_v1 = vpop.f32.mrf.mxu1  ;;  %961 = vmatmul.mubr.f32.gmra.mxu1 %v596_v57  ;;  %v599_v2 = vmul.f32 %v535_v62, %v535_v62  ;;  %v538_v6 = vmax.f32 %v312_v0, 0.0 }
 0x166   :  { %v601_v3 = vmul.f32 %v537_v63, %v537_v63  ;;  %v540_v7 = vmax.f32 %v473_v1, 0.0  ;;  %v314_v8 = vpop.f32.mrf.mxu0 }
 0x167   :  { %v475_v9 = vpop.f32.mrf.mxu1  ;;  %v539_v10 = vmax.f32 %v314_v8, 0.0  ;;  %820 = vmatprep.mubr.f32.mxu0 %v599_v2  ;;  %v602_v14 = vmul.f32 %v538_v6, %v538_v6 }
 0x168   :  { %v541_v11 = vmax.f32 %v475_v9, 0.0  ;;  %965 = vmatprep.mubr.f32.mxu1 %v601_v3  ;;  %821 = vmatmul.mubr.f32.gmra.mxu0 %v598_v4  ;;  %v604_v15 = vmul.f32 %v540_v7, %v540_v7 }
 0x169   :  { %966 = vmatmul.mubr.f32.gmra.mxu1 %v600_v5  ;;  %v603_v12 = vmul.f32 %v539_v10, %v539_v10 }
 0x16a   :  { %v605_v13 = vmul.f32 %v541_v11, %v541_v11 }
 0x16b   :  { %825 = vmatprep.mubr.f32.mxu0 %v603_v12 }
 0x16c   :  { %970 = vmatprep.mubr.f32.mxu1 %v605_v13  ;;  %826 = vmatmul.mubr.f32.gmra.mxu0 %v602_v14 }
 0x16d   :  { %971 = vmatmul.mubr.f32.gmra.mxu1 %v604_v15 }
 0x1f0   :  { %v752_v16 = vpop.f32.mrf.mxu0 }
 0x1f1   :  { %v897_v17 = vpop.f32.mrf.mxu1 }
 0x1f2   :  { %v898_v18 = vadd.f32 %v897_v17, %v752_v16  ;;  %v754_v19 = vpop.f32.mrf.mxu0 }
 0x1f3   :  { %v899_v20 = vpop.f32.mrf.mxu1 }
 0x1f4   :  { %1027 = vst [vmem:[#allocation9] sm:$0xff] %v898_v18  ;;  %v757_v21 = vpop.f32.mrf.mxu0 }
 0x1f5   :  { %v902_v22 = vpop.f32.mrf.mxu1 }
 0x1f6   :  { %v903_v23 = vadd.f32 %v902_v22, %v757_v21  ;;  %v759_v24 = vpop.f32.mrf.mxu0 }
 0x1f7   :  { %v904_v25 = vpop.f32.mrf.mxu1 }
 0x1f8   :  { %1028 = vst [vmem:[#allocation9 + $0x8] sm:$0xff] %v903_v23  ;;  %v762_v26 = vpop.f32.mrf.mxu0 }
 0x1f9   :  { %v907_v27 = vpop.f32.mrf.mxu1 }
 0x1fa   :  { %v908_v28 = vadd.f32 %v907_v27, %v762_v26  ;;  %v764_v29 = vpop.f32.mrf.mxu0 }
 0x1fb   :  { %v909_v30 = vpop.f32.mrf.mxu1 }
 0x1fc   :  { %1029 = vst [vmem:[#allocation9 + $0x10] sm:$0xff] %v908_v28  ;;  %v767_v31 = vpop.f32.mrf.mxu0 }
 0x1fd   :  { %v912_v32 = vpop.f32.mrf.mxu1 }
 0x1fe   :  { %v913_v33 = vadd.f32 %v912_v32, %v767_v31  ;;  %v769_v34 = vpop.f32.mrf.mxu0 }
 0x1ff   :  { %v914_v35 = vpop.f32.mrf.mxu1 }
 0x200   :  { %1030 = vst [vmem:[#allocation9 + $0x18] sm:$0xff] %v913_v33  ;;  %v772_v36 = vpop.f32.mrf.mxu0 }
 0x201   :  { %v917_v37 = vpop.f32.mrf.mxu1 }
 0x202   :  { %v918_v38 = vadd.f32 %v917_v37, %v772_v36  ;;  %v774_v39 = vpop.f32.mrf.mxu0 }
 0x203   :  { %v919_v40 = vpop.f32.mrf.mxu1 }
 0x204   :  { %1031 = vst [vmem:[#allocation9 + $0x20] sm:$0xff] %v918_v38  ;;  %v777_v41 = vpop.f32.mrf.mxu0 }
 0x205   :  { %v922_v42 = vpop.f32.mrf.mxu1 }
 0x206   :  { %v923_v43 = vadd.f32 %v922_v42, %v777_v41  ;;  %v779_v44 = vpop.f32.mrf.mxu0 }
 0x207   :  { %v924_v45 = vpop.f32.mrf.mxu1 }
 0x208   :  { %1032 = vst [vmem:[#allocation9 + $0x28] sm:$0xff] %v923_v43  ;;  %v782_v46 = vpop.f32.mrf.mxu0 }
 0x209   :  { %v927_v47 = vpop.f32.mrf.mxu1 }
 0x20a   :  { %v928_v48 = vadd.f32 %v927_v47, %v782_v46  ;;  %v784_v49 = vpop.f32.mrf.mxu0 }
 0x20b   :  { %v929_v50 = vpop.f32.mrf.mxu1 }
 0x20c   :  { %1033 = vst [vmem:[#allocation9 + $0x30] sm:$0xff] %v928_v48  ;;  %v787_v51 = vpop.f32.mrf.mxu0 }
 0x20d   :  { %v932_v52 = vpop.f32.mrf.mxu1 }
 0x20e   :  { %v933_v53 = vadd.f32 %v932_v52, %v787_v51  ;;  %v789_v54 = vpop.f32.mrf.mxu0 }
 0x20f   :  { %v934_v55 = vpop.f32.mrf.mxu1 }
 0x210   :  { %1034 = vst [vmem:[#allocation9 + $0x38] sm:$0xff] %v933_v53  ;;  %v792_v56 = vpop.f32.mrf.mxu0 }
 0x211   :  { %v937_v57 = vpop.f32.mrf.mxu1 }
 0x212   :  { %v938_v58 = vadd.f32 %v937_v57, %v792_v56  ;;  %v794_v59 = vpop.f32.mrf.mxu0 }
 0x213   :  { %v939_v60 = vpop.f32.mrf.mxu1 }
 0x214   :  { %1035 = vst [vmem:[#allocation9 + $0x40] sm:$0xff] %v938_v58  ;;  %v797_v61 = vpop.f32.mrf.mxu0 }
 0x215   :  { %v942_v62 = vpop.f32.mrf.mxu1 }
 0x216   :  { %v943_v63 = vadd.f32 %v942_v62, %v797_v61  ;;  %v799_v0 = vpop.f32.mrf.mxu0 }
 0x217   :  { %v944_v1 = vpop.f32.mrf.mxu1 }
 0x218   :  { %1036 = vst [vmem:[#allocation9 + $0x48] sm:$0xff] %v943_v63  ;;  %v802_v2 = vpop.f32.mrf.mxu0 }
 0x219   :  { %v947_v3 = vpop.f32.mrf.mxu1 }
 0x21a   :  { %v948_v4 = vadd.f32 %v947_v3, %v802_v2  ;;  %v804_v5 = vpop.f32.mrf.mxu0 }
 0x21b   :  { %v949_v6 = vpop.f32.mrf.mxu1 }
 0x21c   :  { %1037 = vst [vmem:[#allocation9 + $0x50] sm:$0xff] %v948_v4  ;;  %v807_v7 = vpop.f32.mrf.mxu0 }
 0x21d   :  { %v952_v8 = vpop.f32.mrf.mxu1 }
 0x21e   :  { %v953_v9 = vadd.f32 %v952_v8, %v807_v7  ;;  %v809_v10 = vpop.f32.mrf.mxu0 }
 0x21f   :  { %v954_v11 = vpop.f32.mrf.mxu1 }
 0x220   :  { %1038 = vst [vmem:[#allocation9 + $0x58] sm:$0xff] %v953_v9  ;;  %v812_v12 = vpop.f32.mrf.mxu0 }
 0x221   :  { %v957_v13 = vpop.f32.mrf.mxu1 }
 0x222   :  { %v958_v14 = vadd.f32 %v957_v13, %v812_v12  ;;  %v814_v15 = vpop.f32.mrf.mxu0 }
 0x223   :  { %v959_v16 = vpop.f32.mrf.mxu1 }
 0x224   :  { %1039 = vst [vmem:[#allocation9 + $0x60] sm:$0xff] %v958_v14  ;;  %v817_v17 = vpop.f32.mrf.mxu0 }
 0x225   :  { %v962_v18 = vpop.f32.mrf.mxu1 }
 0x226   :  { %v963_v19 = vadd.f32 %v962_v18, %v817_v17  ;;  %v819_v20 = vpop.f32.mrf.mxu0 }
 0x227   :  { %v964_v21 = vpop.f32.mrf.mxu1 }
 0x228   :  { %1040 = vst [vmem:[#allocation9 + $0x68] sm:$0xff] %v963_v19  ;;  %v822_v22 = vpop.f32.mrf.mxu0 }
 0x229   :  { %v967_v23 = vpop.f32.mrf.mxu1 }
 0x22a   :  { %v968_v24 = vadd.f32 %v967_v23, %v822_v22  ;;  %v824_v25 = vpop.f32.mrf.mxu0 }
 0x22b   :  { %v969_v26 = vpop.f32.mrf.mxu1 }
 0x22c   :  { %1041 = vst [vmem:[#allocation9 + $0x70] sm:$0xff] %v968_v24  ;;  %v827_v27 = vpop.f32.mrf.mxu0 }
 0x22d   :  { %v972_v28 = vpop.f32.mrf.mxu1 }
 0x22e   :  { %v973_v29 = vadd.f32 %v972_v28, %v827_v27  ;;  %v829_v30 = vpop.f32.mrf.mxu0 }
 0x22f   :  { %v974_v31 = vpop.f32.mrf.mxu1 }
 0x230   :  { %1042 = vst [vmem:[#allocation9 + $0x78] sm:$0xff] %v973_v29 }
 0x231   :  { %1268 = shalt.err (!%p1265_p5)
}
 0x232   :  { %1054 = dma.vmem_to_hbm [thread:$0]  %s1049_s2, 2048, %s1341_s3, [#allocation5], %s1285_s17, %s1285_s17, %s1286_s18  }
 0x233   :  { %1281 = dma.done.wait [#allocation5], 2048  }
 0x234   :  { %1282 = vsyncadd [#allocation5], 4294965248 }
 0x235   :  { %1058 = vsyncpa [#allocation4], 1 }
 0x236   :  { %1059 = vsyncpa [#allocation7], 1 }
 0x237   :  { %1060 = vsyncpa [#allocation5], 1 }

</bundles_post_ra>
